<compile_context>
chip_gen: v5e
topology: v5e:2x2
jax: 0.10.0
libtpu: 0.0.40
codegen_flags: <defaults>
</compile_context>

<pallas_src>
import functools

import jax
import jax.numpy as jnp
from jax.experimental import pallas as pl
from jax.experimental.pallas import tpu as pltpu


def _round_up(v, m):
    return ((v + m - 1) // m) * m


def _amdn_kernel(x_ref, wmu_ref, wsg_ref, bmu_ref, bsg_ref, mu_ref, sigma_ref,
                 *, compute_dtype):
    """Fused linear + split + sigmoid for one batch tile.

    x_ref     : (TB, K)  f32 input tile (cast to compute_dtype in-kernel)
    wmu_ref   : (K, N)   compute_dtype mu weights      (resident)
    wsg_ref   : (K, N)   compute_dtype sigma weights   (resident)
    bmu_ref   : (1, N)   f32 mu bias                   (resident)
    bsg_ref   : (1, N)   f32 sigma bias                (resident)
    mu_ref    : (TB, N)  f32 out (compact width N)
    sigma_ref : (TB, N)  f32 out (compact width N)
    """
    # Cast in-kernel: HBM reads f32 x exactly once (no separate XLA cast pass).
    x = x_ref[...].astype(compute_dtype)
    mu = jnp.dot(x, wmu_ref[...], preferred_element_type=jnp.float32) + bmu_ref[...]
    sg = jnp.dot(x, wsg_ref[...], preferred_element_type=jnp.float32) + bsg_ref[...]
    mu_ref[...] = mu.astype(mu_ref.dtype)
    # sigmoid lowers to the EUP logistic path (off the VALU slot).
    sigma_ref[...] = jax.nn.sigmoid(sg).astype(sigma_ref.dtype)


def prepare_amdn_params(w, b, *, dim_output, num_components,
                        compute_dtype=jnp.bfloat16):
    """One-time re-layout of PyTorch nn.Linear parameters (kept out of forward).

    w : (2*dim_output*M, dim_input)  -- PyTorch nn.Linear weight layout
    b : (2*dim_output*M,)            -- PyTorch nn.Linear bias
    returns (w_mu (K,N), w_sg (K,N)) in compute_dtype and
            (b_mu (1,N), b_sg (1,N)) in f32, with N = dim_output*M.
    """
    N = dim_output * num_components
    two_n, K = w.shape
    assert two_n == 2 * N and b.shape == (2 * N,)

    w_t = jnp.transpose(w).astype(jnp.float32)      # (K, 2N)
    w_mu = w_t[:, :N].astype(compute_dtype)          # (K, N)
    w_sg = w_t[:, N:].astype(compute_dtype)          # (K, N)
    b_mu = b[:N].reshape(1, N).astype(jnp.float32)
    b_sg = b[N:].reshape(1, N).astype(jnp.float32)
    return w_mu, w_sg, b_mu, b_sg


def _param_spec(shape, single_buffer):
    """BlockSpec for a resident (constant index_map) operand."""
    if single_buffer:
        # Resident operands need no double buffer -> halve their VMEM footprint.
        return pl.BlockSpec(shape, lambda i: (0, 0), pipeline_mode=pl.Buffered(1))
    return pl.BlockSpec(shape, lambda i: (0, 0))


@functools.partial(
    jax.jit,
    static_argnames=("dim_output", "num_components", "block_batch",
                     "compute_dtype", "single_buffer_params"),
)
def amdn_forward(x, w_mu, w_sg, b_mu, b_sg, *, dim_output, num_components,
                 block_batch=None, compute_dtype=jnp.bfloat16,
                 single_buffer_params=True):
    """AdaptiveMixtureDensityModule.forward with pre-laid-out parameters.

    x : (B, dim_input) float32.  Returns (mu, sigma), each (B, M, dim_output) f32.
    """
    B, K = x.shape
    M, D = num_components, dim_output
    N = D * M
    assert w_mu.shape == (K, N) and w_sg.shape == (K, N)
    assert b_mu.shape == (1, N) and b_sg.shape == (1, N)

    # --- Batch tile: multiple of 16 rows, aim for >= 2 grid steps (2-TC shard
    # on v7x), cap at 1024 to amortize per-step overhead without VMEM blowup.
    if block_batch is not None:
        tb = max(16, _round_up(block_batch, 16))
    else:
        tb = _round_up(max(16, pl.cdiv(B, 2)), 16)
        if tb > 256:
            tb = _round_up(tb, 256)      # MXU-friendly large tiles
        tb = min(tb, 1024)
    tb = min(tb, _round_up(B, 16))
    # Non-divisible grid: the ragged last tile reads padded rows and its OOB
    # output rows are masked on store (no wrapper-side jnp.pad / crop needed).
    grid = (pl.cdiv(B, tb),)

    # --- VMEM budget (v7x: 64 MiB physical / ~32 MiB default scoped). --------
    lanes = 128
    n_l = _round_up(N, lanes)
    k_l = _round_up(K, lanes)
    w_item = jnp.dtype(compute_dtype).itemsize
    p_buf = 1 if single_buffer_params else 2
    vmem_need = (2 * p_buf * _round_up(K, 8) * n_l * w_item   # resident weights
                 + 2 * p_buf * 8 * n_l * 4                    # resident biases
                 + 2 * _round_up(tb, 8) * k_l * 4             # x tile, double-buffered
                 + 2 * 2 * _round_up(tb, 8) * n_l * 4)        # two outputs, double-buffered
    vmem_limit = int(min(128 << 20, max(32 << 20, int(vmem_need * 1.5) + (2 << 20))))
    # TODO(synk): when the resident weights (2*K*N*itemsize) exceed ~24 MiB
    # (v7x budget), add a K-tiling grid axis marked "arbitrary" with an f32
    # VMEM accumulator scratch and pl.when init/finalize.

    kernel = functools.partial(_amdn_kernel, compute_dtype=compute_dtype)

    mu_flat, sigma_flat = pl.pallas_call(
        kernel,
        out_shape=(
            jax.ShapeDtypeStruct((B, N), jnp.float32),
            jax.ShapeDtypeStruct((B, N), jnp.float32),
        ),
        grid_spec=pltpu.PrefetchScalarGridSpec(
            num_scalar_prefetch=0,
            grid=grid,
            in_specs=[
                pl.BlockSpec((tb, K), lambda i: (i, 0)),     # x batch tile (f32)
                _param_spec((K, N), single_buffer_params),   # w_mu, resident
                _param_spec((K, N), single_buffer_params),   # w_sg, resident
                _param_spec((1, N), single_buffer_params),   # b_mu, resident
                _param_spec((1, N), single_buffer_params),   # b_sg, resident
            ],
            out_specs=[
                pl.BlockSpec((tb, N), lambda i: (i, 0)),     # mu  (compact width N)
                pl.BlockSpec((tb, N), lambda i: (i, 0)),     # sigma (compact width N)
            ],
        ),
        compiler_params=pltpu.CompilerParams(
            dimension_semantics=("parallel",),               # 2-TC shard on v7x
            vmem_limit_bytes=vmem_limit,
        ),
    )(x, w_mu, w_sg, b_mu, b_sg)

    # (B, N) -> (B, M, D) are contiguous reshapes (free; match torch .view).
    return mu_flat.reshape(B, M, D), sigma_flat.reshape(B, M, D)


if __name__ == "__main__":
    # Small shapes consistent with the module; batch chosen so the grid has
    # 2 steps with a ragged (masked) last tile.
    batch = 48
    dim_input = 32
    dim_output = 4
    num_components = 3                      # M
    two_n = 2 * dim_output * num_components  # 24

    key = jax.random.PRNGKey(0)
    kx, kw, kb = jax.random.split(key, 3)

    x = jax.random.normal(kx, (batch, dim_input), dtype=jnp.float32)

    # Deterministic nn.Linear-style init: U(-1/sqrt(fan_in), 1/sqrt(fan_in))
    bound = 1.0 / (dim_input ** 0.5)
    w = jax.random.uniform(kw, (two_n, dim_input), jnp.float32, -bound, bound)
    b = jax.random.uniform(kb, (two_n,), jnp.float32, -bound, bound)

    # One-time parameter re-layout (kept out of the steady-state forward path).
    w_mu_p, w_sg_p, b_mu_p, b_sg_p = prepare_amdn_params(
        w, b, dim_output=dim_output, num_components=num_components
    )

    run = functools.partial(amdn_forward, dim_output=dim_output,
                            num_components=num_components)
    try:
        mu, sigma = run(x, w_mu_p, w_sg_p, b_mu_p, b_sg_p,
                        single_buffer_params=True)
        jax.block_until_ready((mu, sigma))
    except Exception:
        # Fallback if this JAX build rejects single-buffered resident operands
        # (pl.Buffered(1)); the double-buffered path is otherwise identical.
        mu, sigma = run(x, w_mu_p, w_sg_p, b_mu_p, b_sg_p,
                        single_buffer_params=False)
        jax.block_until_ready((mu, sigma))

    # Sanity check against a pure-JAX f32 reference of the PyTorch forward.
    N = dim_output * num_components
    p_ref = x @ w.T + b
    mu_ref = p_ref[:, :N].reshape(batch, num_components, dim_output)
    sigma_ref = jax.nn.sigmoid(p_ref[:, N:]).reshape(batch, num_components, dim_output)

    assert mu.shape == (batch, num_components, dim_output)
    assert sigma.shape == (batch, num_components, dim_output)
    # bf16 MXU inputs with f32 accumulation -> tolerances loosened accordingly.
    assert jnp.allclose(mu, mu_ref, atol=3e-2, rtol=3e-2)
    assert jnp.allclose(sigma, sigma_ref, atol=2e-2, rtol=2e-2)

    print("KERNEL_OK")
</pallas_src>

<mosaic_0001>
module attributes {stable_mosaic.version = 11 : i64} {
  func.func @_amdn_kernel(%arg0: i32, %arg1: memref<32x32xf32, #tpu.memory_space<vmem>>, %arg2: memref<32x12xbf16, #tpu.memory_space<vmem>>, %arg3: memref<32x12xbf16, #tpu.memory_space<vmem>>, %arg4: memref<1x12xf32, #tpu.memory_space<vmem>>, %arg5: memref<1x12xf32, #tpu.memory_space<vmem>>, %arg6: memref<32x12xf32, #tpu.memory_space<vmem>>, %arg7: memref<32x12xf32, #tpu.memory_space<vmem>>) attributes {dimension_semantics = [#tpu.dimension_semantics<parallel>], iteration_bounds = array<i64: 2>, scalar_prefetch = 0 : i64, scratch_operands = 0 : i64, tpu.core_type = #tpu.core_type<tc>, window_params = [{transform_indices = @transform_0, window_bounds = array<i64: 32, 32>}, {pipeline_mode = #tpu.pipeline_mode<synchronous>, transform_indices = @transform_1, window_bounds = array<i64: 32, 12>}, {pipeline_mode = #tpu.pipeline_mode<synchronous>, transform_indices = @transform_2, window_bounds = array<i64: 32, 12>}, {pipeline_mode = #tpu.pipeline_mode<synchronous>, transform_indices = @transform_3, window_bounds = array<i64: 1, 12>}, {pipeline_mode = #tpu.pipeline_mode<synchronous>, transform_indices = @transform_4, window_bounds = array<i64: 1, 12>}, {transform_indices = @transform_5, window_bounds = array<i64: 32, 12>}, {transform_indices = @transform_6, window_bounds = array<i64: 32, 12>}]} {
    %c0 = arith.constant 0 : index
    %c0_0 = arith.constant 0 : index
    %0 = vector.load %arg1[%c0, %c0_0] : memref<32x32xf32, #tpu.memory_space<vmem>>, vector<32x32xf32>
    %1 = arith.truncf %0 : vector<32x32xf32> to vector<32x32xbf16>
    %c0_1 = arith.constant 0 : index
    %c0_2 = arith.constant 0 : index
    %2 = vector.load %arg2[%c0_1, %c0_2] : memref<32x12xbf16, #tpu.memory_space<vmem>>, vector<32x12xbf16>
    %cst = arith.constant dense<0.000000e+00> : vector<32x12xf32>
    %3 = tpu.matmul %1, %2, %cst {dimension_numbers = #tpu.dot_dimension_numbers<[1], [0], [0], [1], [0, 0, 1, 1], [], []>} : vector<32x32xbf16>, vector<32x12xbf16>, vector<32x12xf32> -> vector<32x12xf32>
    %c0_3 = arith.constant 0 : index
    %c0_4 = arith.constant 0 : index
    %4 = vector.load %arg4[%c0_3, %c0_4] : memref<1x12xf32, #tpu.memory_space<vmem>>, vector<1x12xf32>
    %5 = vector.broadcast %4 : vector<1x12xf32> to vector<32x12xf32>
    %6 = arith.addf %3, %5 : vector<32x12xf32>
    %c0_5 = arith.constant 0 : index
    %c0_6 = arith.constant 0 : index
    %7 = vector.load %arg3[%c0_5, %c0_6] : memref<32x12xbf16, #tpu.memory_space<vmem>>, vector<32x12xbf16>
    %cst_7 = arith.constant dense<0.000000e+00> : vector<32x12xf32>
    %8 = tpu.matmul %1, %7, %cst_7 {dimension_numbers = #tpu.dot_dimension_numbers<[1], [0], [0], [1], [0, 0, 1, 1], [], []>} : vector<32x32xbf16>, vector<32x12xbf16>, vector<32x12xf32> -> vector<32x12xf32>
    %c0_8 = arith.constant 0 : index
    %c0_9 = arith.constant 0 : index
    %9 = vector.load %arg5[%c0_8, %c0_9] : memref<1x12xf32, #tpu.memory_space<vmem>>, vector<1x12xf32>
    %10 = vector.broadcast %9 : vector<1x12xf32> to vector<32x12xf32>
    %11 = arith.addf %8, %10 : vector<32x12xf32>
    %c0_10 = arith.constant 0 : index
    %c0_11 = arith.constant 0 : index
    %12 = vector.load %arg6[%c0_10, %c0_11] : memref<32x12xf32, #tpu.memory_space<vmem>>, vector<32x12xf32>
    tpu.vector_store %arg6[%c0_10, %c0_11], %6 {strides = array<i32>} : memref<32x12xf32, #tpu.memory_space<vmem>>, vector<32x12xf32>,
    %13 = arith.negf %11 : vector<32x12xf32>
    %14 = math.exp %13 : vector<32x12xf32>
    %cst_12 = arith.constant 1.000000e+00 : f32
    %15 = vector.broadcast %cst_12 : f32 to vector<32x12xf32>
    %16 = arith.addf %15, %14 : vector<32x12xf32>
    %17 = arith.divf %15, %16 : vector<32x12xf32>
    %c0_13 = arith.constant 0 : index
    %c0_14 = arith.constant 0 : index
    %18 = vector.load %arg7[%c0_13, %c0_14] : memref<32x12xf32, #tpu.memory_space<vmem>>, vector<32x12xf32>
    tpu.vector_store %arg7[%c0_13, %c0_14], %17 {strides = array<i32>} : memref<32x12xf32, #tpu.memory_space<vmem>>, vector<32x12xf32>,
    return
  }
  func.func @transform_0(%arg0: i32) -> (i32, i32) {
    %c0_i32 = arith.constant 0 : i32
    %c0_i32_0 = arith.constant 0 : i32
    return %arg0, %c0_i32 : i32, i32
  }
  func.func @transform_1(%arg0: i32) -> (i32, i32) {
    %c0_i32 = arith.constant 0 : i32
    %c0_i32_0 = arith.constant 0 : i32
    %c0_i32_1 = arith.constant 0 : i32
    return %c0_i32, %c0_i32_0 : i32, i32
  }
  func.func @transform_2(%arg0: i32) -> (i32, i32) {
    %c0_i32 = arith.constant 0 : i32
    %c0_i32_0 = arith.constant 0 : i32
    %c0_i32_1 = arith.constant 0 : i32
    return %c0_i32, %c0_i32_0 : i32, i32
  }
  func.func @transform_3(%arg0: i32) -> (i32, i32) {
    %c0_i32 = arith.constant 0 : i32
    %c0_i32_0 = arith.constant 0 : i32
    %c0_i32_1 = arith.constant 0 : i32
    return %c0_i32, %c0_i32_0 : i32, i32
  }
  func.func @transform_4(%arg0: i32) -> (i32, i32) {
    %c0_i32 = arith.constant 0 : i32
    %c0_i32_0 = arith.constant 0 : i32
    %c0_i32_1 = arith.constant 0 : i32
    return %c0_i32, %c0_i32_0 : i32, i32
  }
  func.func @transform_5(%arg0: i32) -> (i32, i32) {
    %c0_i32 = arith.constant 0 : i32
    %c0_i32_0 = arith.constant 0 : i32
    return %arg0, %c0_i32 : i32, i32
  }
  func.func @transform_6(%arg0: i32) -> (i32, i32) {
    %c0_i32 = arith.constant 0 : i32
    %c0_i32_0 = arith.constant 0 : i32
    return %arg0, %c0_i32 : i32, i32
  }
}

module attributes {stable_mosaic.version = 11 : i64} {
  func.func @_amdn_kernel(%arg0: i32, %arg1: memref<32x32xf32, #tpu.memory_space<vmem>>, %arg2: memref<32x12xbf16, #tpu.memory_space<vmem>>, %arg3: memref<32x12xbf16, #tpu.memory_space<vmem>>, %arg4: memref<1x12xf32, #tpu.memory_space<vmem>>, %arg5: memref<1x12xf32, #tpu.memory_space<vmem>>, %arg6: memref<32x12xf32, #tpu.memory_space<vmem>>, %arg7: memref<32x12xf32, #tpu.memory_space<vmem>>) attributes {dimension_semantics = [#tpu.dimension_semantics<parallel>], iteration_bounds = array<i64: 2>, scalar_prefetch = 0 : i64, scratch_operands = 0 : i64, tpu.core_type = #tpu.core_type<tc>, window_params = [{transform_indices = @transform_0, window_bounds = array<i64: 32, 32>}, {pipeline_mode = #tpu.pipeline_mode<synchronous>, transform_indices = @transform_1, window_bounds = array<i64: 32, 12>}, {pipeline_mode = #tpu.pipeline_mode<synchronous>, transform_indices = @transform_2, window_bounds = array<i64: 32, 12>}, {pipeline_mode = #tpu.pipeline_mode<synchronous>, transform_indices = @transform_3, window_bounds = array<i64: 1, 12>}, {pipeline_mode = #tpu.pipeline_mode<synchronous>, transform_indices = @transform_4, window_bounds = array<i64: 1, 12>}, {transform_indices = @transform_5, window_bounds = array<i64: 32, 12>}, {transform_indices = @transform_6, window_bounds = array<i64: 32, 12>}]} {
    %c0 = arith.constant 0 : index
    %c0_0 = arith.constant 0 : index
    %0 = vector.load %arg1[%c0, %c0_0] : memref<32x32xf32, #tpu.memory_space<vmem>>, vector<32x32xf32>
    %1 = arith.truncf %0 : vector<32x32xf32> to vector<32x32xbf16>
    %c0_1 = arith.constant 0 : index
    %c0_2 = arith.constant 0 : index
    %2 = vector.load %arg2[%c0_1, %c0_2] : memref<32x12xbf16, #tpu.memory_space<vmem>>, vector<32x12xbf16>
    %cst = arith.constant dense<0.000000e+00> : vector<32x12xf32>
    %3 = tpu.matmul %1, %2, %cst {dimension_numbers = #tpu.dot_dimension_numbers<[1], [0], [0], [1], [0, 0, 1, 1], [], []>} : vector<32x32xbf16>, vector<32x12xbf16>, vector<32x12xf32> -> vector<32x12xf32>
    %c0_3 = arith.constant 0 : index
    %c0_4 = arith.constant 0 : index
    %4 = vector.load %arg4[%c0_3, %c0_4] : memref<1x12xf32, #tpu.memory_space<vmem>>, vector<1x12xf32>
    %5 = vector.broadcast %4 : vector<1x12xf32> to vector<32x12xf32>
    %6 = arith.addf %3, %5 : vector<32x12xf32>
    %c0_5 = arith.constant 0 : index
    %c0_6 = arith.constant 0 : index
    %7 = vector.load %arg3[%c0_5, %c0_6] : memref<32x12xbf16, #tpu.memory_space<vmem>>, vector<32x12xbf16>
    %cst_7 = arith.constant dense<0.000000e+00> : vector<32x12xf32>
    %8 = tpu.matmul %1, %7, %cst_7 {dimension_numbers = #tpu.dot_dimension_numbers<[1], [0], [0], [1], [0, 0, 1, 1], [], []>} : vector<32x32xbf16>, vector<32x12xbf16>, vector<32x12xf32> -> vector<32x12xf32>
    %c0_8 = arith.constant 0 : index
    %c0_9 = arith.constant 0 : index
    %9 = vector.load %arg5[%c0_8, %c0_9] : memref<1x12xf32, #tpu.memory_space<vmem>>, vector<1x12xf32>
    %10 = vector.broadcast %9 : vector<1x12xf32> to vector<32x12xf32>
    %11 = arith.addf %8, %10 : vector<32x12xf32>
    %c0_10 = arith.constant 0 : index
    %c0_11 = arith.constant 0 : index
    %12 = vector.load %arg6[%c0_10, %c0_11] : memref<32x12xf32, #tpu.memory_space<vmem>>, vector<32x12xf32>
    tpu.vector_store %arg6[%c0_10, %c0_11], %6 {strides = array<i32>} : memref<32x12xf32, #tpu.memory_space<vmem>>, vector<32x12xf32>,
    %13 = arith.negf %11 : vector<32x12xf32>
    %14 = math.exp %13 : vector<32x12xf32>
    %cst_12 = arith.constant 1.000000e+00 : f32
    %15 = vector.broadcast %cst_12 : f32 to vector<32x12xf32>
    %16 = arith.addf %15, %14 : vector<32x12xf32>
    %17 = arith.divf %15, %16 : vector<32x12xf32>
    %c0_13 = arith.constant 0 : index
    %c0_14 = arith.constant 0 : index
    %18 = vector.load %arg7[%c0_13, %c0_14] : memref<32x12xf32, #tpu.memory_space<vmem>>, vector<32x12xf32>
    tpu.vector_store %arg7[%c0_13, %c0_14], %17 {strides = array<i32>} : memref<32x12xf32, #tpu.memory_space<vmem>>, vector<32x12xf32>,
    return
  }
  func.func @transform_0(%arg0: i32) -> (i32, i32) {
    %c0_i32 = arith.constant 0 : i32
    %c0_i32_0 = arith.constant 0 : i32
    return %arg0, %c0_i32 : i32, i32
  }
  func.func @transform_1(%arg0: i32) -> (i32, i32) {
    %c0_i32 = arith.constant 0 : i32
    %c0_i32_0 = arith.constant 0 : i32
    %c0_i32_1 = arith.constant 0 : i32
    return %c0_i32, %c0_i32_0 : i32, i32
  }
  func.func @transform_2(%arg0: i32) -> (i32, i32) {
    %c0_i32 = arith.constant 0 : i32
    %c0_i32_0 = arith.constant 0 : i32
    %c0_i32_1 = arith.constant 0 : i32
    return %c0_i32, %c0_i32_0 : i32, i32
  }
  func.func @transform_3(%arg0: i32) -> (i32, i32) {
    %c0_i32 = arith.constant 0 : i32
    %c0_i32_0 = arith.constant 0 : i32
    %c0_i32_1 = arith.constant 0 : i32
    return %c0_i32, %c0_i32_0 : i32, i32
  }
  func.func @transform_4(%arg0: i32) -> (i32, i32) {
    %c0_i32 = arith.constant 0 : i32
    %c0_i32_0 = arith.constant 0 : i32
    %c0_i32_1 = arith.constant 0 : i32
    return %c0_i32, %c0_i32_0 : i32, i32
  }
  func.func @transform_5(%arg0: i32) -> (i32, i32) {
    %c0_i32 = arith.constant 0 : i32
    %c0_i32_0 = arith.constant 0 : i32
    return %arg0, %c0_i32 : i32, i32
  }
  func.func @transform_6(%arg0: i32) -> (i32, i32) {
    %c0_i32 = arith.constant 0 : i32
    %c0_i32_0 = arith.constant 0 : i32
    return %arg0, %c0_i32 : i32, i32
  }
}

</mosaic_0001>

<bundles_post_ra>
// kernel: amdn_forward.1
= control target key start
LH: loop header
LB: loop body
LE: loop exit
PB: predicated region body
PF: predicated region fallthrough
CT: control target
= control target key end

     0   :  { %s1330_s21 = smov 0   ;;  %s1332_s22 = smov 0   ;;  %s1512_s0 = inlined_call_operand.vmem [shape: f32[48,32], index: 0, kind: input, shape index: {}]   ;;  %s1513_s1 = inlined_call_operand.vmem [shape: bf16[32,12], index: 1, kind: input, shape index: {}]   ;;  %s1514_s2 = inlined_call_operand.vmem [shape: bf16[32,12], index: 2, kind: input, shape index: {}]   ;;  %s1515_s3 = inlined_call_operand.vmem [shape: f32[1,12], index: 3, kind: input, shape index: {}]   ;;  %s1516_s4 = inlined_call_operand.vmem [shape: f32[1,12], index: 4, kind: input, shape index: {}]   ;;  %s1517_s5 = inlined_call_operand.vmem [shape: f32[48,12], index: 5, kind: output, shape index: {0}]   ;;  %s1518_s6 = inlined_call_operand.vmem [shape: f32[48,12], index: 6, kind: output, shape index: {1}]  }
   0x1   :  { %s1334_s23 = smov 0  }
   0x2 LB: > { %s1343_s24 = sadd.s32 4294967295, %s1229_s23   ;;  %s1345_s25 = sadd.s32 1, %s1229_s23   ;;  %s1229_s23 = sphi %s1334_s23, %s1528_s23   ;;  %s1225_s22 = sphi %s1332_s22, %s1527_s22   ;;  %s1221_s21 = sphi %s1330_s21, %s1526_s21  }
   0x3   : > { %s131_s26 = ssub.s32 %s1229_s23, %s1345_s25  ;;  %s134_s27 = sadd.s32 1, %s1225_s22 }
   0x4   : > { %p132_p0 = scmp.eq.s32.totalorder %s131_s26, 0  ;;  %p144_p1 = scmp.ne.s32.totalorder %s1225_s22, %s1221_s21 }
   0x5   : > { %p145_p2 = scmp.eq.s32.totalorder %s1343_s24, 1  ;;  %p898_p3 = scmp.ge.s32.totalorder %s1229_s23, 1 }
   0x6   : > { %s1353_s28 = scalar_select %p132_p0, %s1225_s22, %s134_s27  }
   0x7   : > { %p1355_p4 = por %p145_p2, %p144_p1  ;;  %p224_p5 = scmp.lt.s32.totalorder %s1229_s23, 3 }
   0x9   : > { %p225_p6 = pnand %p898_p3, %p224_p5 }
   0xa   : > { %s1363_s8 = sshll.u32 (!%p225_p6), %s1343_s24, 2  ;;  %s252_s26 = sand.u32 (!%p225_p6), 1, %s1221_s21  }
   0xb   : > { %228 = sbr.rel (%p225_p6) target bundleno = 278 (0x116), region = 40  ;;  %p266_p7 = scmp.lt.s32.totalorder (!%p225_p6), %s1363_s8, 5 }
   0xc   : > { %s1383_s27 = sshll.u32 (!%p225_p6), %s252_s26, 5 }
   0xd   : > { %s1389_s9 = scalar_lea.vmem (!%p225_p6), [#allocation2], %s1383_s27   ;;  %s1400_s21 = scalar_lea.vmem (!%p225_p6), [#allocation3], %s1383_s27  }
  0x10   : > { %v962_v0 = vld [vmem:[%s1514_s2 + $0x8] sm:$0xff]  ;;  %v961_v2 = vld [vmem:[%s1514_s2] sm:$0xff]  ;;  %s267_s13 = scalar_select %p266_p7, %s1363_s8, 5  ;;  %vm312_vm0 = vcmask 261120   ;;  %vm377_vm1 = vcmask 97280  }
  0x11   : > { %v960_v1 = vld [vmem:[%s1513_s1 + $0x8] sm:$0xff]  ;;  %364 = vmatpush.bf16.msra.mxu1 %v962_v0  ;;  %971 = vmatpush.bf16.msra.mxu3 %v962_v0  ;;  %v959_v3 = vld [vmem:[%s1513_s1] sm:$0xff]  ;;  %s474_s10 = ssub.s32 (%p1355_p4), 6, %s1363_s8  ;;  %s963_s11 = sshll.u32 (%p1355_p4), %s1343_s24, 5 }
  0x12   : > { %969 = vmatpush.bf16.msra.mxu2 %v960_v1  ;;  %325 = vmatpush.bf16.msra.mxu0 %v960_v1  ;;  %s902_s16 = sshll.u32 %s267_s13, 3  ;;  %v1125_v10 = vld [vmem:[%s1516_s4] ss:$0 sm:$0xff]  ;;  %p475_p8 = scmp.lt.s32.totalorder (%p1355_p4), %s474_s10, 4 }
  0x13   : > { %s269_s19 = scalar_lea.vmem %s1512_s0, %s902_s16  ;;  %v1126_v15 = vld [vmem:[%s1515_s3] ss:$0 sm:$0xff]  ;;  %s1417_s14 = scalar_lea.vmem (%p1355_p4), %s1517_s5, %s963_s11  }
  0x14   : > { %v286_v4 = vld [vmem:[%s269_s19] sm:$0xff]  ;;  %v287_v5 = vld [vmem:[%s269_s19 + $0x8] sm:$0xff]  ;;  %v288_v6 = vld [vmem:[%s269_s19 + $0x10] sm:$0xff] }
  0x15   : > { %365 = vmatpush.bf16.msra.mxu1 %v961_v2  ;;  %972 = vmatpush.bf16.msra.mxu3 %v961_v2  ;;  %v290_v7 = vpack.c.bf16 %v287_v5, %v286_v4  ;;  %v289_v8 = vld [vmem:[%s269_s19 + $0x18] sm:$0xff] }
  0x16   : > { %970 = vmatpush.bf16.msra.mxu2 %v959_v3  ;;  %326 = vmatpush.bf16.msra.mxu0 %v959_v3  ;;  %v291_v9 = vpack.c.bf16 %v289_v8, %v288_v6 }
  0x18   : > { %921 = vmatmul.msk.bf16.vlgmr.msra.gmra.mxu1 %vm312_vm0, %v290_v7  ;;  %922 = vmatmul.msk.bf16.vlgmr.msra.gmra.mxu3 %vm312_vm0, %v291_v9 }
  0x19   : > { %911 = vmatmul.msk.bf16.vlgmr.msra.gmra.mxu0 %vm312_vm0, %v290_v7  ;;  %912 = vmatmul.msk.bf16.vlgmr.msra.gmra.mxu2 %vm312_vm0, %v291_v9 }
  0x95   : > { %v367_v11 = vpop.f32.mrf.mxu1 }
  0x96   : > { %v328_v12 = vpop.f32.mrf.mxu0  ;;  %v368_v13 = vadd.f32 %v1125_v10, %v367_v11 }
  0x97   : > { %v329_v16 = vadd.f32 %v1126_v15, %v328_v12 }
  0x98   : > { %v923_v14 = vmul.f32 -1.442695, %v368_v13 }
  0x99   : > { %378 = vst.msk [vmem:[%s1389_s9] sm:$0xff] %vm377_vm1, %v329_v16 }
  0x9a   : > { %1127 = vpow2.f32 %v923_v14 }
  0x9b   : > { %v372_v17 = vpop.f32.mrf.mxu3 }
  0x9c   : > { %v333_v18 = vpop.f32.mrf.mxu2  ;;  %v373_v19 = vadd.f32 %v1125_v10, %v372_v17 }
  0x9d   : > { %v369_v20 = vpop.f32.mrf.mxu1  ;;  %v334_v21 = vadd.f32 %v1126_v15, %v333_v18 }
  0x9e   : > { %v330_v22 = vpop.f32.mrf.mxu0  ;;  %v370_v23 = vadd.f32 %v1125_v10, %v369_v20  ;;  %v925_v25 = vmul.f32 -1.442695, %v373_v19 }
  0x9f   : > { %v331_v24 = vadd.f32 %v1126_v15, %v330_v22  ;;  %380 = vst.msk [vmem:[%s1389_s9 + $0x10] sm:$0xff] %vm377_vm1, %v334_v21 }
  0xa0   : > { %v1128_v26 = vpop.eup %1127  ;;  %v924_v27 = vmul.f32 -1.442695, %v370_v23  ;;  %1129 = vpow2.f32 %v925_v25 }
  0xa1   : > { %379 = vst.msk [vmem:[%s1389_s9 + $0x8] sm:$0xff] %vm377_vm1, %v331_v24  ;;  %v394_v28 = vadd.f32 1.0, %v1128_v26 }
  0xa2   : > { %1131 = vpow2.f32 %v924_v27 }
  0xa3   : > { %1133 = vrcp.f32 %v394_v28  ;;  %v374_v29 = vpop.f32.mrf.mxu3  ;;  %vm403_vm2 = vweird.f32 %v394_v28  ;;  %v409_v42 = vand.u32 2147483648, %v394_v28  ;;  %v407_v44 = vand.u32 2147483647, %v394_v28 }
  0xa4   : > { %v335_v30 = vpop.f32.mrf.mxu2  ;;  %v375_v31 = vadd.f32 %v1125_v10, %v374_v29 }
  0xa5   : > { %v336_v32 = vadd.f32 %v1126_v15, %v335_v30  ;;  %v410_v51 = vor.u32 1.1754944e-38, %v409_v42  ;;  %vm408_vm5 = vcmp.eq.f32.partialorder %v407_v44, 8.507059e+37 }
  0xa6   : > { %v1130_v33 = vpop.eup %1129  ;;  %v926_v34 = vmul.f32 -1.442695, %v375_v31 }
  0xa7   : > { %381 = vst.msk [vmem:[%s1389_s9 + $0x18] sm:$0xff] %vm377_vm1, %v336_v32  ;;  %v396_v36 = vadd.f32 1.0, %v1130_v33 }
  0xa8   : > { %v1132_v35 = vpop.eup %1131  ;;  %1135 = vpow2.f32 %v926_v34 }
  0xa9   : > { %v1134_v37 = vpop.eup %1133  ;;  %v395_v38 = vadd.f32 1.0, %v1132_v35  ;;  %1137 = vrcp.f32 %v396_v36  ;;  %v439_v54 = vand.u32 2147483648, %v396_v36  ;;  %v437_v58 = vand.u32 2147483647, %v396_v36 }
  0xaa   : > { %v399_v39 = vmul.f32 %v1134_v37, %v394_v28  ;;  %vm404_vm3 = vweird.f32 %v1134_v37  ;;  %vm433_vm8 = vweird.f32 %v396_v36 }
  0xab   : > { %1139 = vrcp.f32 %v395_v38  ;;  %vm405_vm4 = vmor %vm403_vm2, %vm404_vm3  ;;  %v424_v59 = vand.u32 2147483648, %v395_v38  ;;  %v422_v61 = vand.u32 2147483647, %v395_v38  ;;  %v440_v0 = vor.u32 1.1754944e-38, %v439_v54 }
  0xac   : > { %v400_v40 = vsub.f32 1.0, %v399_v39  ;;  %vm418_vm10 = vweird.f32 %v395_v38  ;;  %vm438_vm11 = vcmp.eq.f32.partialorder %v437_v58, 8.507059e+37 }
  0xad   : > { %v425_v3 = vor.u32 1.1754944e-38, %v424_v59  ;;  %vm423_vm13 = vcmp.eq.f32.partialorder %v422_v61, 8.507059e+37 }
  0xae   : > { %v401_v41 = vmul.f32 %v1134_v37, %v400_v40  ;;  %v1136_v43 = vpop.eup %1135 }
  0xaf   : > { %v1138_v45 = vpop.eup %1137  ;;  %v397_v47 = vadd.f32 1.0, %v1136_v43 }
  0xb0   : > { %v402_v46 = vadd.f32 %v1134_v37, %v401_v41  ;;  %v429_v49 = vmul.f32 %v1138_v45, %v396_v36  ;;  %vm434_vm6 = vweird.f32 %v1138_v45 }
  0xb1   : > { %v1140_v48 = vpop.eup %1139  ;;  %1141 = vrcp.f32 %v397_v47  ;;  %vm435_vm9 = vmor %vm433_vm8, %vm434_vm6  ;;  %v454_v9 = vand.u32 2147483648, %v397_v47  ;;  %v452_v11 = vand.u32 2147483647, %v397_v47  ;;  %vm448_vm15 = vweird.f32 %v397_v47 }
  0xb2   : > { %v406_v50 = vsel %vm405_vm4, %v1134_v37, %v402_v46  ;;  %v414_v52 = vmul.f32 %v1140_v48, %v395_v38  ;;  %v430_v53 = vsub.f32 1.0, %v429_v49  ;;  %vm419_vm7 = vweird.f32 %v1140_v48 }
  0xb3   : > { %v411_v56 = vsel %vm408_vm5, %v410_v51, %v406_v50  ;;  %vm420_vm12 = vmor %vm418_vm10, %vm419_vm7  ;;  %v455_v13 = vor.u32 1.1754944e-38, %v454_v9  ;;  %vm453_vm2 = vcmp.eq.f32.partialorder %v452_v11, 8.507059e+37 }
  0xb4   : > { %v415_v55 = vsub.f32 1.0, %v414_v52  ;;  %v431_v57 = vmul.f32 %v1138_v45, %v430_v53  ;;  %458 = vst.msk [vmem:[%s1400_s21] sm:$0xff] %vm377_vm1, %v411_v56 }
  0xb6   : > { %v416_v60 = vmul.f32 %v1140_v48, %v415_v55  ;;  %v432_v62 = vadd.f32 %v1138_v45, %v431_v57 }
  0xb7   : > { %v1142_v63 = vpop.eup %1141 }
  0xb8   : > { %v417_v1 = vadd.f32 %v1140_v48, %v416_v60  ;;  %v436_v2 = vsel %vm435_vm9, %v1138_v45, %v432_v62  ;;  %v444_v4 = vmul.f32 %v1142_v63, %v397_v47  ;;  %vm449_vm14 = vweird.f32 %v1142_v63 }
  0xb9   : > { %v441_v6 = vsel %vm438_vm11, %v440_v0, %v436_v2  ;;  %vm450_vm0 = vmor %vm448_vm15, %vm449_vm14 }
  0xba   : > { %v421_v5 = vsel %vm420_vm12, %v1140_v48, %v417_v1  ;;  %v445_v7 = vsub.f32 1.0, %v444_v4  ;;  %460 = vst.msk [vmem:[%s1400_s21 + $0x10] sm:$0xff] %vm377_vm1, %v441_v6 }
  0xbb   : > { %v426_v8 = vsel %vm423_vm13, %v425_v3, %v421_v5 }
  0xbc   : > { %459 = vst.msk [vmem:[%s1400_s21 + $0x8] sm:$0xff] %vm377_vm1, %v426_v8  ;;  %v446_v10 = vmul.f32 %v1142_v63, %v445_v7 }
  0xbe   : > { %v447_v12 = vadd.f32 %v1142_v63, %v446_v10  ;;  %472 = sbr.rel (!%p1355_p4) target bundleno = 234 (0xea), region = 44 }
  0xc0   : > { %v451_v14 = vsel %vm450_vm0, %v1142_v63, %v447_v12 }
  0xc1   : > { %v456_v15 = vsel %vm453_vm2, %v455_v13, %v451_v14 }
  0xc2   : > { %461 = vst.msk [vmem:[%s1400_s21 + $0x18] sm:$0xff] %vm377_vm1, %v456_v15 }
  0xc3   : > { %s1530_s10 = smov (!%p475_p8, %s474_s10), 4 }
  0xc4   : > { %s930_s15 = sshll.u32 %s1530_s10, 3 }
  0xc5   : > { %p933_p9 = scmp.eq.s32.totalorder %s930_s15, 0 }
  0xc6   : > { %s1423_s16 = sshrl.u32 (!%p933_p9), %s1530_s10, 2 }
  0xc7   : > { %483 = sbr.rel (%p933_p9) target bundleno = 234 (0xea), region = 48  ;;  %p934_p10 = scmp.le.s32.totalorder (!%p933_p9), %s1423_s16, 0 }
  0xcc   : > { %814 = sbr.rel (%p934_p10) target bundleno = 217 (0xd9), region = 196  ;;  %s1520_s17 = smov (!%p934_p10), %s1417_s14 }
  0xcd   : > { %s1521_s18 = smov (!%p934_p10), %s1389_s9  ;;  %s1432_s19 = smov (!%p934_p10), 0  }
  0xce   : > { %s1243_s20 = smov (!%p934_p10), 0  }
  0xd1 LB: >> { %v552_v16 = vld [vmem:[%s1237_s18] sm:$0xff]  ;;  %v554_v17 = vld [vmem:[%s1237_s18 + $0x8] sm:$0xff]  ;;  %v556_v18 = vld [vmem:[%s1237_s18 + $0x10] sm:$0xff]  ;;  %s560_s23 = sadd.s32 1, %s1241_s19  ;;  %s546_s20 = sadd.s32 1, %s1245_s20   ;;  %s1245_s20 = sphi %s1243_s20, %s546_s20   ;;  %s1241_s19 = sphi %s1432_s19, %s1522_s19   ;;  %s1237_s18 = sphi %s1521_s18, %s565_s18   ;;  %s1233_s17 = sphi %s1520_s17, %s566_s17  }
  0xd2   : >> { %553 = vst [vmem:[%s1233_s17] sm:$0xff] %v552_v16  ;;  %v558_v19 = vld [vmem:[%s1237_s18 + $0x18] sm:$0xff]  ;;  %p561_p11 = scmp.ge.s32.totalorder %s560_s23, %s1423_s16  ;;  %p545_p12 = scmp.ge.s32.totalorder %s546_s20, %s1423_s16 }
  0xd3   : >> { %555 = vst [vmem:[%s1233_s17 + $0x8] sm:$0xff] %v554_v17 }
  0xd4   : >> { %557 = vst [vmem:[%s1233_s17 + $0x10] sm:$0xff] %v556_v18  ;;  %s1532_s23 = smov (%p561_p11, %s560_s23), 0  ;;  %548 = sbr.rel (!%p545_p12) target bundleno = 209 (0xd1), region = 202 }
  0xd5   : >> { %559 = vst [vmem:[%s1233_s17 + $0x18] sm:$0xff] %v558_v19  ;;  %s935_s26 = sshll.u32 %s1532_s23, 5  ;;  %s1522_s19 = smov %s1532_s23 }
  0xd6   : >> { %s565_s18 = scalar_lea.vmem %s1389_s9, %s935_s26 [#allocation2]   ;;  %s566_s17 = scalar_lea.vmem %s1417_s14, %s935_s26  }
  0xd9 PF: > { %s1448_s27 = sand.u32 3, %s1530_s10   ;;  %s964_s30 = sshll.u32 %s1423_s16, 5 }
  0xda   : > { %s571_s7 = scalar_lea.vmem %s1389_s9, %s964_s30 [#allocation2]   ;;  %s573_s11 = scalar_lea.vmem %s1417_s14, %s964_s30  }
  0xdb   : > { %p940_p13 = scmp.le.s32.totalorder %s1448_s27, 0 }
  0xdc   : > { %s1247_s12 = smov (!%p940_p13), %s573_s11   ;;  %s1251_s13 = smov (!%p940_p13), %s571_s7  }
  0xdd   : > { %828 = sbr.rel (%p940_p13) target bundleno = 234 (0xea), region = 207  ;;  %s1255_s15 = smov (!%p940_p13), 0  }
  0xde   : > { %s1259_s19 = smov (!%p940_p13), 0  }
  0xe2 LB: >> { %v583_v20 = vld [vmem:[%s1253_s13] sm:$0xff]  ;;  %s585_s10 = sadd.s32 1, %s1257_s15  ;;  %s577_s19 = sadd.s32 1, %s1261_s19   ;;  %s1261_s19 = sphi %s1259_s19, %s577_s19   ;;  %s1257_s15 = sphi %s1255_s15, %s1256_s15   ;;  %s1253_s13 = sphi %s1251_s13, %s590_s13   ;;  %s1249_s12 = sphi %s1247_s12, %s591_s12  }
  0xe3   : >> { %584 = vst [vmem:[%s1249_s12] sm:$0xff] %v583_v20  ;;  %p586_p0 = scmp.ge.s32.totalorder %s585_s10, %s1448_s27  ;;  %p576_p1 = scmp.ge.s32.totalorder %s577_s19, %s1448_s27 }
  0xe5   : >> { %s1534_s10 = smov (%p586_p0, %s585_s10), 0  ;;  %579 = sbr.rel (!%p576_p1) target bundleno = 226 (0xe2), region = 213 }
  0xe6   : >> { %s941_s9 = sshll.u32 %s1534_s10, 3  ;;  %s1256_s15 = smov %s1534_s10  }
  0xe7   : >> { %s590_s13 = scalar_lea.vmem %s571_s7, %s941_s9 [#allocation2]   ;;  %s591_s12 = scalar_lea.vmem %s573_s11, %s941_s9  }
  0xea PF: > { %597 = sbr.rel (!%p1355_p4) target bundleno = 278 (0x116), region = 96  ;;  %s599_s14 = ssub.s32 (%p1355_p4), 6, %s1363_s8 }
  0xeb   : > { %s966_s16 = sshll.u32 (%p1355_p4), %s1343_s24, 5  ;;  %p600_p2 = scmp.lt.s32.totalorder (%p1355_p4), %s599_s14, 4 }
  0xec   : > { %s1463_s20 = scalar_lea.vmem (%p1355_p4), %s1518_s6, %s966_s16  }
  0xef   : > { %s1536_s14 = smov (!%p600_p2, %s599_s14), 4 }
  0xf0   : > { %s944_s23 = sshll.u32 %s1536_s14, 3 }
  0xf1   : > { %p947_p3 = scmp.eq.s32.totalorder %s944_s23, 0 }
  0xf2   : > { %s1469_s26 = sshrl.u32 (!%p947_p3), %s1536_s14, 2 }
  0xf3   : > { %608 = sbr.rel (%p947_p3) target bundleno = 278 (0x116), region = 100  ;;  %p948_p4 = scmp.le.s32.totalorder (!%p947_p3), %s1469_s26, 0 }
  0xf8   : > { %842 = sbr.rel (%p948_p4) target bundleno = 261 (0x105), region = 218  ;;  %s1523_s24 = smov (!%p948_p4), %s1463_s20 }
  0xf9   : > { %s1524_s29 = smov (!%p948_p4), %s1400_s21  ;;  %s1478_s8 = smov (!%p948_p4), 0  }
  0xfa   : > { %s1275_s27 = smov (!%p948_p4), 0  }
  0xfd LB: >> { %v677_v21 = vld [vmem:[%s1269_s29] sm:$0xff]  ;;  %v679_v22 = vld [vmem:[%s1269_s29 + $0x8] sm:$0xff]  ;;  %v681_v23 = vld [vmem:[%s1269_s29 + $0x10] sm:$0xff]  ;;  %s685_s30 = sadd.s32 1, %s1273_s8  ;;  %s671_s27 = sadd.s32 1, %s1277_s27   ;;  %s1277_s27 = sphi %s1275_s27, %s671_s27   ;;  %s1273_s8 = sphi %s1478_s8, %s1525_s8   ;;  %s1269_s29 = sphi %s1524_s29, %s690_s29   ;;  %s1265_s24 = sphi %s1523_s24, %s691_s24  }
  0xfe   : >> { %678 = vst [vmem:[%s1265_s24] sm:$0xff] %v677_v21  ;;  %v683_v24 = vld [vmem:[%s1269_s29 + $0x18] sm:$0xff]  ;;  %p686_p5 = scmp.ge.s32.totalorder %s685_s30, %s1469_s26  ;;  %p670_p6 = scmp.ge.s32.totalorder %s671_s27, %s1469_s26 }
  0xff   : >> { %680 = vst [vmem:[%s1265_s24 + $0x8] sm:$0xff] %v679_v22 }
 0x100   : >> { %682 = vst [vmem:[%s1265_s24 + $0x10] sm:$0xff] %v681_v23  ;;  %s1538_s30 = smov (%p686_p5, %s685_s30), 0  ;;  %673 = sbr.rel (!%p670_p6) target bundleno = 253 (0xfd), region = 224 }
 0x101   : >> { %684 = vst [vmem:[%s1265_s24 + $0x18] sm:$0xff] %v683_v24  ;;  %s949_s7 = sshll.u32 %s1538_s30, 5  ;;  %s1525_s8 = smov %s1538_s30 }
 0x102   : >> { %s690_s29 = scalar_lea.vmem %s1400_s21, %s949_s7 [#allocation3]   ;;  %s691_s24 = scalar_lea.vmem %s1463_s20, %s949_s7  }
 0x105 PF: > { %s1494_s11 = sand.u32 3, %s1536_s14   ;;  %s967_s12 = sshll.u32 %s1469_s26, 5 }
 0x106   : > { %s696_s13 = scalar_lea.vmem %s1400_s21, %s967_s12 [#allocation3]   ;;  %s698_s15 = scalar_lea.vmem %s1463_s20, %s967_s12  }
 0x107   : > { %p954_p7 = scmp.le.s32.totalorder %s1494_s11, 0 }
 0x108   : > { %s1279_s19 = smov (!%p954_p7), %s698_s15   ;;  %s1283_s10 = smov (!%p954_p7), %s696_s13  }
 0x109   : > { %856 = sbr.rel (%p954_p7) target bundleno = 278 (0x116), region = 229  ;;  %s1287_s9 = smov (!%p954_p7), 0  }
 0x10a   : > { %s1291_s16 = smov (!%p954_p7), 0  }
 0x10e LB: >> { %v708_v25 = vld [vmem:[%s1285_s10] sm:$0xff]  ;;  %s710_s14 = sadd.s32 1, %s1289_s9  ;;  %s702_s16 = sadd.s32 1, %s1293_s16   ;;  %s1293_s16 = sphi %s1291_s16, %s702_s16   ;;  %s1289_s9 = sphi %s1287_s9, %s1288_s9   ;;  %s1285_s10 = sphi %s1283_s10, %s715_s10   ;;  %s1281_s19 = sphi %s1279_s19, %s716_s19  }
 0x10f   : >> { %709 = vst [vmem:[%s1281_s19] sm:$0xff] %v708_v25  ;;  %p711_p8 = scmp.ge.s32.totalorder %s710_s14, %s1494_s11  ;;  %p701_p9 = scmp.ge.s32.totalorder %s702_s16, %s1494_s11 }
 0x111   : >> { %s1540_s14 = smov (%p711_p8, %s710_s14), 0  ;;  %704 = sbr.rel (!%p701_p9) target bundleno = 270 (0x10e), region = 235 }
 0x112   : >> { %s955_s21 = sshll.u32 %s1540_s14, 3  ;;  %s1288_s9 = smov %s1540_s14  }
 0x113   : >> { %s715_s10 = scalar_lea.vmem %s696_s13, %s955_s21 [#allocation3]   ;;  %s716_s19 = scalar_lea.vmem %s698_s15, %s955_s21  }
 0x116 PF: > { %p14_p10 = scmp.ge.s32.totalorder %s1345_s25, 4   ;;  %s1526_s21 = smov %s1225_s22 }
 0x117   : > { %s1527_s22 = smov %s1353_s28  ;;  %s1528_s23 = smov %s1345_s25 }
 0x118   :  { %16 = sbr.rel (!%p14_p10) target bundleno = 2 (0x2), region = 246 }

// kernel: amdn_forward.1
= control target key start
LH: loop header
LB: loop body
LE: loop exit
PB: predicated region body
PF: predicated region fallthrough
CT: control target
= control target key end

     0   :  { %s1330_s21 = smov 0   ;;  %s1332_s22 = smov 0   ;;  %s1512_s0 = inlined_call_operand.vmem [shape: f32[48,32], index: 0, kind: input, shape index: {}]   ;;  %s1513_s1 = inlined_call_operand.vmem [shape: bf16[32,12], index: 1, kind: input, shape index: {}]   ;;  %s1514_s2 = inlined_call_operand.vmem [shape: bf16[32,12], index: 2, kind: input, shape index: {}]   ;;  %s1515_s3 = inlined_call_operand.vmem [shape: f32[1,12], index: 3, kind: input, shape index: {}]   ;;  %s1516_s4 = inlined_call_operand.vmem [shape: f32[1,12], index: 4, kind: input, shape index: {}]   ;;  %s1517_s5 = inlined_call_operand.vmem [shape: f32[48,12], index: 5, kind: output, shape index: {0}]   ;;  %s1518_s6 = inlined_call_operand.vmem [shape: f32[48,12], index: 6, kind: output, shape index: {1}]  }
   0x1   :  { %s1334_s23 = smov 0  }
   0x2 LB: > { %s1343_s24 = sadd.s32 4294967295, %s1229_s23   ;;  %s1345_s25 = sadd.s32 1, %s1229_s23   ;;  %s1229_s23 = sphi %s1334_s23, %s1528_s23   ;;  %s1225_s22 = sphi %s1332_s22, %s1527_s22   ;;  %s1221_s21 = sphi %s1330_s21, %s1526_s21  }
   0x3   : > { %s131_s26 = ssub.s32 %s1229_s23, %s1345_s25  ;;  %s134_s27 = sadd.s32 1, %s1225_s22 }
   0x4   : > { %p132_p0 = scmp.eq.s32.totalorder %s131_s26, 0  ;;  %p144_p1 = scmp.ne.s32.totalorder %s1225_s22, %s1221_s21 }
   0x5   : > { %p145_p2 = scmp.eq.s32.totalorder %s1343_s24, 1  ;;  %p898_p3 = scmp.ge.s32.totalorder %s1229_s23, 1 }
   0x6   : > { %s1353_s28 = scalar_select %p132_p0, %s1225_s22, %s134_s27  }
   0x7   : > { %p1355_p4 = por %p145_p2, %p144_p1  ;;  %p224_p5 = scmp.lt.s32.totalorder %s1229_s23, 3 }
   0x9   : > { %p225_p6 = pnand %p898_p3, %p224_p5 }
   0xa   : > { %s1363_s8 = sshll.u32 (!%p225_p6), %s1343_s24, 2  ;;  %s252_s26 = sand.u32 (!%p225_p6), 1, %s1221_s21  }
   0xb   : > { %228 = sbr.rel (%p225_p6) target bundleno = 278 (0x116), region = 40  ;;  %p266_p7 = scmp.lt.s32.totalorder (!%p225_p6), %s1363_s8, 5 }
   0xc   : > { %s1383_s27 = sshll.u32 (!%p225_p6), %s252_s26, 5 }
   0xd   : > { %s1389_s9 = scalar_lea.vmem (!%p225_p6), [#allocation2], %s1383_s27   ;;  %s1400_s21 = scalar_lea.vmem (!%p225_p6), [#allocation3], %s1383_s27  }
  0x10   : > { %v962_v0 = vld [vmem:[%s1514_s2 + $0x8] sm:$0xff]  ;;  %v961_v2 = vld [vmem:[%s1514_s2] sm:$0xff]  ;;  %s267_s13 = scalar_select %p266_p7, %s1363_s8, 5  ;;  %vm312_vm0 = vcmask 261120   ;;  %vm377_vm1 = vcmask 97280  }
  0x11   : > { %v960_v1 = vld [vmem:[%s1513_s1 + $0x8] sm:$0xff]  ;;  %364 = vmatpush.bf16.msra.mxu1 %v962_v0  ;;  %971 = vmatpush.bf16.msra.mxu3 %v962_v0  ;;  %v959_v3 = vld [vmem:[%s1513_s1] sm:$0xff]  ;;  %s474_s10 = ssub.s32 (%p1355_p4), 6, %s1363_s8  ;;  %s963_s11 = sshll.u32 (%p1355_p4), %s1343_s24, 5 }
  0x12   : > { %969 = vmatpush.bf16.msra.mxu2 %v960_v1  ;;  %325 = vmatpush.bf16.msra.mxu0 %v960_v1  ;;  %s902_s16 = sshll.u32 %s267_s13, 3  ;;  %v1125_v10 = vld [vmem:[%s1516_s4] ss:$0 sm:$0xff]  ;;  %p475_p8 = scmp.lt.s32.totalorder (%p1355_p4), %s474_s10, 4 }
  0x13   : > { %s269_s19 = scalar_lea.vmem %s1512_s0, %s902_s16  ;;  %v1126_v15 = vld [vmem:[%s1515_s3] ss:$0 sm:$0xff]  ;;  %s1417_s14 = scalar_lea.vmem (%p1355_p4), %s1517_s5, %s963_s11  }
  0x14   : > { %v286_v4 = vld [vmem:[%s269_s19] sm:$0xff]  ;;  %v287_v5 = vld [vmem:[%s269_s19 + $0x8] sm:$0xff]  ;;  %v288_v6 = vld [vmem:[%s269_s19 + $0x10] sm:$0xff] }
  0x15   : > { %365 = vmatpush.bf16.msra.mxu1 %v961_v2  ;;  %972 = vmatpush.bf16.msra.mxu3 %v961_v2  ;;  %v290_v7 = vpack.c.bf16 %v287_v5, %v286_v4  ;;  %v289_v8 = vld [vmem:[%s269_s19 + $0x18] sm:$0xff] }
  0x16   : > { %970 = vmatpush.bf16.msra.mxu2 %v959_v3  ;;  %326 = vmatpush.bf16.msra.mxu0 %v959_v3  ;;  %v291_v9 = vpack.c.bf16 %v289_v8, %v288_v6 }
  0x18   : > { %921 = vmatmul.msk.bf16.vlgmr.msra.gmra.mxu1 %vm312_vm0, %v290_v7  ;;  %922 = vmatmul.msk.bf16.vlgmr.msra.gmra.mxu3 %vm312_vm0, %v291_v9 }
  0x19   : > { %911 = vmatmul.msk.bf16.vlgmr.msra.gmra.mxu0 %vm312_vm0, %v290_v7  ;;  %912 = vmatmul.msk.bf16.vlgmr.msra.gmra.mxu2 %vm312_vm0, %v291_v9 }
  0x95   : > { %v367_v11 = vpop.f32.mrf.mxu1 }
  0x96   : > { %v328_v12 = vpop.f32.mrf.mxu0  ;;  %v368_v13 = vadd.f32 %v1125_v10, %v367_v11 }
  0x97   : > { %v329_v16 = vadd.f32 %v1126_v15, %v328_v12 }
  0x98   : > { %v923_v14 = vmul.f32 -1.442695, %v368_v13 }
  0x99   : > { %378 = vst.msk [vmem:[%s1389_s9] sm:$0xff] %vm377_vm1, %v329_v16 }
  0x9a   : > { %1127 = vpow2.f32 %v923_v14 }
  0x9b   : > { %v372_v17 = vpop.f32.mrf.mxu3 }
  0x9c   : > { %v333_v18 = vpop.f32.mrf.mxu2  ;;  %v373_v19 = vadd.f32 %v1125_v10, %v372_v17 }
  0x9d   : > { %v369_v20 = vpop.f32.mrf.mxu1  ;;  %v334_v21 = vadd.f32 %v1126_v15, %v333_v18 }
  0x9e   : > { %v330_v22 = vpop.f32.mrf.mxu0  ;;  %v370_v23 = vadd.f32 %v1125_v10, %v369_v20  ;;  %v925_v25 = vmul.f32 -1.442695, %v373_v19 }
  0x9f   : > { %v331_v24 = vadd.f32 %v1126_v15, %v330_v22  ;;  %380 = vst.msk [vmem:[%s1389_s9 + $0x10] sm:$0xff] %vm377_vm1, %v334_v21 }
  0xa0   : > { %v1128_v26 = vpop.eup %1127  ;;  %v924_v27 = vmul.f32 -1.442695, %v370_v23  ;;  %1129 = vpow2.f32 %v925_v25 }
  0xa1   : > { %379 = vst.msk [vmem:[%s1389_s9 + $0x8] sm:$0xff] %vm377_vm1, %v331_v24  ;;  %v394_v28 = vadd.f32 1.0, %v1128_v26 }
  0xa2   : > { %1131 = vpow2.f32 %v924_v27 }
  0xa3   : > { %1133 = vrcp.f32 %v394_v28  ;;  %v374_v29 = vpop.f32.mrf.mxu3  ;;  %vm403_vm2 = vweird.f32 %v394_v28  ;;  %v409_v42 = vand.u32 2147483648, %v394_v28  ;;  %v407_v44 = vand.u32 2147483647, %v394_v28 }
  0xa4   : > { %v335_v30 = vpop.f32.mrf.mxu2  ;;  %v375_v31 = vadd.f32 %v1125_v10, %v374_v29 }
  0xa5   : > { %v336_v32 = vadd.f32 %v1126_v15, %v335_v30  ;;  %v410_v51 = vor.u32 1.1754944e-38, %v409_v42  ;;  %vm408_vm5 = vcmp.eq.f32.partialorder %v407_v44, 8.507059e+37 }
  0xa6   : > { %v1130_v33 = vpop.eup %1129  ;;  %v926_v34 = vmul.f32 -1.442695, %v375_v31 }
  0xa7   : > { %381 = vst.msk [vmem:[%s1389_s9 + $0x18] sm:$0xff] %vm377_vm1, %v336_v32  ;;  %v396_v36 = vadd.f32 1.0, %v1130_v33 }
  0xa8   : > { %v1132_v35 = vpop.eup %1131  ;;  %1135 = vpow2.f32 %v926_v34 }
  0xa9   : > { %v1134_v37 = vpop.eup %1133  ;;  %v395_v38 = vadd.f32 1.0, %v1132_v35  ;;  %1137 = vrcp.f32 %v396_v36  ;;  %v439_v54 = vand.u32 2147483648, %v396_v36  ;;  %v437_v58 = vand.u32 2147483647, %v396_v36 }
  0xaa   : > { %v399_v39 = vmul.f32 %v1134_v37, %v394_v28  ;;  %vm404_vm3 = vweird.f32 %v1134_v37  ;;  %vm433_vm8 = vweird.f32 %v396_v36 }
  0xab   : > { %1139 = vrcp.f32 %v395_v38  ;;  %vm405_vm4 = vmor %vm403_vm2, %vm404_vm3  ;;  %v424_v59 = vand.u32 2147483648, %v395_v38  ;;  %v422_v61 = vand.u32 2147483647, %v395_v38  ;;  %v440_v0 = vor.u32 1.1754944e-38, %v439_v54 }
  0xac   : > { %v400_v40 = vsub.f32 1.0, %v399_v39  ;;  %vm418_vm10 = vweird.f32 %v395_v38  ;;  %vm438_vm11 = vcmp.eq.f32.partialorder %v437_v58, 8.507059e+37 }
  0xad   : > { %v425_v3 = vor.u32 1.1754944e-38, %v424_v59  ;;  %vm423_vm13 = vcmp.eq.f32.partialorder %v422_v61, 8.507059e+37 }
  0xae   : > { %v401_v41 = vmul.f32 %v1134_v37, %v400_v40  ;;  %v1136_v43 = vpop.eup %1135 }
  0xaf   : > { %v1138_v45 = vpop.eup %1137  ;;  %v397_v47 = vadd.f32 1.0, %v1136_v43 }
  0xb0   : > { %v402_v46 = vadd.f32 %v1134_v37, %v401_v41  ;;  %v429_v49 = vmul.f32 %v1138_v45, %v396_v36  ;;  %vm434_vm6 = vweird.f32 %v1138_v45 }
  0xb1   : > { %v1140_v48 = vpop.eup %1139  ;;  %1141 = vrcp.f32 %v397_v47  ;;  %vm435_vm9 = vmor %vm433_vm8, %vm434_vm6  ;;  %v454_v9 = vand.u32 2147483648, %v397_v47  ;;  %v452_v11 = vand.u32 2147483647, %v397_v47  ;;  %vm448_vm15 = vweird.f32 %v397_v47 }
  0xb2   : > { %v406_v50 = vsel %vm405_vm4, %v1134_v37, %v402_v46  ;;  %v414_v52 = vmul.f32 %v1140_v48, %v395_v38  ;;  %v430_v53 = vsub.f32 1.0, %v429_v49  ;;  %vm419_vm7 = vweird.f32 %v1140_v48 }
  0xb3   : > { %v411_v56 = vsel %vm408_vm5, %v410_v51, %v406_v50  ;;  %vm420_vm12 = vmor %vm418_vm10, %vm419_vm7  ;;  %v455_v13 = vor.u32 1.1754944e-38, %v454_v9  ;;  %vm453_vm2 = vcmp.eq.f32.partialorder %v452_v11, 8.507059e+37 }
  0xb4   : > { %v415_v55 = vsub.f32 1.0, %v414_v52  ;;  %v431_v57 = vmul.f32 %v1138_v45, %v430_v53  ;;  %458 = vst.msk [vmem:[%s1400_s21] sm:$0xff] %vm377_vm1, %v411_v56 }
  0xb6   : > { %v416_v60 = vmul.f32 %v1140_v48, %v415_v55  ;;  %v432_v62 = vadd.f32 %v1138_v45, %v431_v57 }
  0xb7   : > { %v1142_v63 = vpop.eup %1141 }
  0xb8   : > { %v417_v1 = vadd.f32 %v1140_v48, %v416_v60  ;;  %v436_v2 = vsel %vm435_vm9, %v1138_v45, %v432_v62  ;;  %v444_v4 = vmul.f32 %v1142_v63, %v397_v47  ;;  %vm449_vm14 = vweird.f32 %v1142_v63 }
  0xb9   : > { %v441_v6 = vsel %vm438_vm11, %v440_v0, %v436_v2  ;;  %vm450_vm0 = vmor %vm448_vm15, %vm449_vm14 }
  0xba   : > { %v421_v5 = vsel %vm420_vm12, %v1140_v48, %v417_v1  ;;  %v445_v7 = vsub.f32 1.0, %v444_v4  ;;  %460 = vst.msk [vmem:[%s1400_s21 + $0x10] sm:$0xff] %vm377_vm1, %v441_v6 }
  0xbb   : > { %v426_v8 = vsel %vm423_vm13, %v425_v3, %v421_v5 }
  0xbc   : > { %459 = vst.msk [vmem:[%s1400_s21 + $0x8] sm:$0xff] %vm377_vm1, %v426_v8  ;;  %v446_v10 = vmul.f32 %v1142_v63, %v445_v7 }
  0xbe   : > { %v447_v12 = vadd.f32 %v1142_v63, %v446_v10  ;;  %472 = sbr.rel (!%p1355_p4) target bundleno = 234 (0xea), region = 44 }
  0xc0   : > { %v451_v14 = vsel %vm450_vm0, %v1142_v63, %v447_v12 }
  0xc1   : > { %v456_v15 = vsel %vm453_vm2, %v455_v13, %v451_v14 }
  0xc2   : > { %461 = vst.msk [vmem:[%s1400_s21 + $0x18] sm:$0xff] %vm377_vm1, %v456_v15 }
  0xc3   : > { %s1530_s10 = smov (!%p475_p8, %s474_s10), 4 }
  0xc4   : > { %s930_s15 = sshll.u32 %s1530_s10, 3 }
  0xc5   : > { %p933_p9 = scmp.eq.s32.totalorder %s930_s15, 0 }
  0xc6   : > { %s1423_s16 = sshrl.u32 (!%p933_p9), %s1530_s10, 2 }
  0xc7   : > { %483 = sbr.rel (%p933_p9) target bundleno = 234 (0xea), region = 48  ;;  %p934_p10 = scmp.le.s32.totalorder (!%p933_p9), %s1423_s16, 0 }
  0xcc   : > { %814 = sbr.rel (%p934_p10) target bundleno = 217 (0xd9), region = 196  ;;  %s1520_s17 = smov (!%p934_p10), %s1417_s14 }
  0xcd   : > { %s1521_s18 = smov (!%p934_p10), %s1389_s9  ;;  %s1432_s19 = smov (!%p934_p10), 0  }
  0xce   : > { %s1243_s20 = smov (!%p934_p10), 0  }
  0xd1 LB: >> { %v552_v16 = vld [vmem:[%s1237_s18] sm:$0xff]  ;;  %v554_v17 = vld [vmem:[%s1237_s18 + $0x8] sm:$0xff]  ;;  %v556_v18 = vld [vmem:[%s1237_s18 + $0x10] sm:$0xff]  ;;  %s560_s23 = sadd.s32 1, %s1241_s19  ;;  %s546_s20 = sadd.s32 1, %s1245_s20   ;;  %s1245_s20 = sphi %s1243_s20, %s546_s20   ;;  %s1241_s19 = sphi %s1432_s19, %s1522_s19   ;;  %s1237_s18 = sphi %s1521_s18, %s565_s18   ;;  %s1233_s17 = sphi %s1520_s17, %s566_s17  }
  0xd2   : >> { %553 = vst [vmem:[%s1233_s17] sm:$0xff] %v552_v16  ;;  %v558_v19 = vld [vmem:[%s1237_s18 + $0x18] sm:$0xff]  ;;  %p561_p11 = scmp.ge.s32.totalorder %s560_s23, %s1423_s16  ;;  %p545_p12 = scmp.ge.s32.totalorder %s546_s20, %s1423_s16 }
  0xd3   : >> { %555 = vst [vmem:[%s1233_s17 + $0x8] sm:$0xff] %v554_v17 }
  0xd4   : >> { %557 = vst [vmem:[%s1233_s17 + $0x10] sm:$0xff] %v556_v18  ;;  %s1532_s23 = smov (%p561_p11, %s560_s23), 0  ;;  %548 = sbr.rel (!%p545_p12) target bundleno = 209 (0xd1), region = 202 }
  0xd5   : >> { %559 = vst [vmem:[%s1233_s17 + $0x18] sm:$0xff] %v558_v19  ;;  %s935_s26 = sshll.u32 %s1532_s23, 5  ;;  %s1522_s19 = smov %s1532_s23 }
  0xd6   : >> { %s565_s18 = scalar_lea.vmem %s1389_s9, %s935_s26 [#allocation2]   ;;  %s566_s17 = scalar_lea.vmem %s1417_s14, %s935_s26  }
  0xd9 PF: > { %s1448_s27 = sand.u32 3, %s1530_s10   ;;  %s964_s30 = sshll.u32 %s1423_s16, 5 }
  0xda   : > { %s571_s7 = scalar_lea.vmem %s1389_s9, %s964_s30 [#allocation2]   ;;  %s573_s11 = scalar_lea.vmem %s1417_s14, %s964_s30  }
  0xdb   : > { %p940_p13 = scmp.le.s32.totalorder %s1448_s27, 0 }
  0xdc   : > { %s1247_s12 = smov (!%p940_p13), %s573_s11   ;;  %s1251_s13 = smov (!%p940_p13), %s571_s7  }
  0xdd   : > { %828 = sbr.rel (%p940_p13) target bundleno = 234 (0xea), region = 207  ;;  %s1255_s15 = smov (!%p940_p13), 0  }
  0xde   : > { %s1259_s19 = smov (!%p940_p13), 0  }
  0xe2 LB: >> { %v583_v20 = vld [vmem:[%s1253_s13] sm:$0xff]  ;;  %s585_s10 = sadd.s32 1, %s1257_s15  ;;  %s577_s19 = sadd.s32 1, %s1261_s19   ;;  %s1261_s19 = sphi %s1259_s19, %s577_s19   ;;  %s1257_s15 = sphi %s1255_s15, %s1256_s15   ;;  %s1253_s13 = sphi %s1251_s13, %s590_s13   ;;  %s1249_s12 = sphi %s1247_s12, %s591_s12  }
  0xe3   : >> { %584 = vst [vmem:[%s1249_s12] sm:$0xff] %v583_v20  ;;  %p586_p0 = scmp.ge.s32.totalorder %s585_s10, %s1448_s27  ;;  %p576_p1 = scmp.ge.s32.totalorder %s577_s19, %s1448_s27 }
  0xe5   : >> { %s1534_s10 = smov (%p586_p0, %s585_s10), 0  ;;  %579 = sbr.rel (!%p576_p1) target bundleno = 226 (0xe2), region = 213 }
  0xe6   : >> { %s941_s9 = sshll.u32 %s1534_s10, 3  ;;  %s1256_s15 = smov %s1534_s10  }
  0xe7   : >> { %s590_s13 = scalar_lea.vmem %s571_s7, %s941_s9 [#allocation2]   ;;  %s591_s12 = scalar_lea.vmem %s573_s11, %s941_s9  }
  0xea PF: > { %597 = sbr.rel (!%p1355_p4) target bundleno = 278 (0x116), region = 96  ;;  %s599_s14 = ssub.s32 (%p1355_p4), 6, %s1363_s8 }
  0xeb   : > { %s966_s16 = sshll.u32 (%p1355_p4), %s1343_s24, 5  ;;  %p600_p2 = scmp.lt.s32.totalorder (%p1355_p4), %s599_s14, 4 }
  0xec   : > { %s1463_s20 = scalar_lea.vmem (%p1355_p4), %s1518_s6, %s966_s16  }
  0xef   : > { %s1536_s14 = smov (!%p600_p2, %s599_s14), 4 }
  0xf0   : > { %s944_s23 = sshll.u32 %s1536_s14, 3 }
  0xf1   : > { %p947_p3 = scmp.eq.s32.totalorder %s944_s23, 0 }
  0xf2   : > { %s1469_s26 = sshrl.u32 (!%p947_p3), %s1536_s14, 2 }
  0xf3   : > { %608 = sbr.rel (%p947_p3) target bundleno = 278 (0x116), region = 100  ;;  %p948_p4 = scmp.le.s32.totalorder (!%p947_p3), %s1469_s26, 0 }
  0xf8   : > { %842 = sbr.rel (%p948_p4) target bundleno = 261 (0x105), region = 218  ;;  %s1523_s24 = smov (!%p948_p4), %s1463_s20 }
  0xf9   : > { %s1524_s29 = smov (!%p948_p4), %s1400_s21  ;;  %s1478_s8 = smov (!%p948_p4), 0  }
  0xfa   : > { %s1275_s27 = smov (!%p948_p4), 0  }
  0xfd LB: >> { %v677_v21 = vld [vmem:[%s1269_s29] sm:$0xff]  ;;  %v679_v22 = vld [vmem:[%s1269_s29 + $0x8] sm:$0xff]  ;;  %v681_v23 = vld [vmem:[%s1269_s29 + $0x10] sm:$0xff]  ;;  %s685_s30 = sadd.s32 1, %s1273_s8  ;;  %s671_s27 = sadd.s32 1, %s1277_s27   ;;  %s1277_s27 = sphi %s1275_s27, %s671_s27   ;;  %s1273_s8 = sphi %s1478_s8, %s1525_s8   ;;  %s1269_s29 = sphi %s1524_s29, %s690_s29   ;;  %s1265_s24 = sphi %s1523_s24, %s691_s24  }
  0xfe   : >> { %678 = vst [vmem:[%s1265_s24] sm:$0xff] %v677_v21  ;;  %v683_v24 = vld [vmem:[%s1269_s29 + $0x18] sm:$0xff]  ;;  %p686_p5 = scmp.ge.s32.totalorder %s685_s30, %s1469_s26  ;;  %p670_p6 = scmp.ge.s32.totalorder %s671_s27, %s1469_s26 }
  0xff   : >> { %680 = vst [vmem:[%s1265_s24 + $0x8] sm:$0xff] %v679_v22 }
 0x100   : >> { %682 = vst [vmem:[%s1265_s24 + $0x10] sm:$0xff] %v681_v23  ;;  %s1538_s30 = smov (%p686_p5, %s685_s30), 0  ;;  %673 = sbr.rel (!%p670_p6) target bundleno = 253 (0xfd), region = 224 }
 0x101   : >> { %684 = vst [vmem:[%s1265_s24 + $0x18] sm:$0xff] %v683_v24  ;;  %s949_s7 = sshll.u32 %s1538_s30, 5  ;;  %s1525_s8 = smov %s1538_s30 }
 0x102   : >> { %s690_s29 = scalar_lea.vmem %s1400_s21, %s949_s7 [#allocation3]   ;;  %s691_s24 = scalar_lea.vmem %s1463_s20, %s949_s7  }
 0x105 PF: > { %s1494_s11 = sand.u32 3, %s1536_s14   ;;  %s967_s12 = sshll.u32 %s1469_s26, 5 }
 0x106   : > { %s696_s13 = scalar_lea.vmem %s1400_s21, %s967_s12 [#allocation3]   ;;  %s698_s15 = scalar_lea.vmem %s1463_s20, %s967_s12  }
 0x107   : > { %p954_p7 = scmp.le.s32.totalorder %s1494_s11, 0 }
 0x108   : > { %s1279_s19 = smov (!%p954_p7), %s698_s15   ;;  %s1283_s10 = smov (!%p954_p7), %s696_s13  }
 0x109   : > { %856 = sbr.rel (%p954_p7) target bundleno = 278 (0x116), region = 229  ;;  %s1287_s9 = smov (!%p954_p7), 0  }
 0x10a   : > { %s1291_s16 = smov (!%p954_p7), 0  }
 0x10e LB: >> { %v708_v25 = vld [vmem:[%s1285_s10] sm:$0xff]  ;;  %s710_s14 = sadd.s32 1, %s1289_s9  ;;  %s702_s16 = sadd.s32 1, %s1293_s16   ;;  %s1293_s16 = sphi %s1291_s16, %s702_s16   ;;  %s1289_s9 = sphi %s1287_s9, %s1288_s9   ;;  %s1285_s10 = sphi %s1283_s10, %s715_s10   ;;  %s1281_s19 = sphi %s1279_s19, %s716_s19  }
 0x10f   : >> { %709 = vst [vmem:[%s1281_s19] sm:$0xff] %v708_v25  ;;  %p711_p8 = scmp.ge.s32.totalorder %s710_s14, %s1494_s11  ;;  %p701_p9 = scmp.ge.s32.totalorder %s702_s16, %s1494_s11 }
 0x111   : >> { %s1540_s14 = smov (%p711_p8, %s710_s14), 0  ;;  %704 = sbr.rel (!%p701_p9) target bundleno = 270 (0x10e), region = 235 }
 0x112   : >> { %s955_s21 = sshll.u32 %s1540_s14, 3  ;;  %s1288_s9 = smov %s1540_s14  }
 0x113   : >> { %s715_s10 = scalar_lea.vmem %s696_s13, %s955_s21 [#allocation3]   ;;  %s716_s19 = scalar_lea.vmem %s698_s15, %s955_s21  }
 0x116 PF: > { %p14_p10 = scmp.ge.s32.totalorder %s1345_s25, 4   ;;  %s1526_s21 = smov %s1225_s22 }
 0x117   : > { %s1527_s22 = smov %s1353_s28  ;;  %s1528_s23 = smov %s1345_s25 }
 0x118   :  { %16 = sbr.rel (!%p14_p10) target bundleno = 2 (0x2), region = 246 }

</bundles_post_ra>
